<compile_context>
chip_gen: v5e
topology: v5e:2x2
jax: 0.10.0
libtpu: 0.0.40
codegen_flags: <defaults>
</compile_context>

<pallas_src>
import jax
import jax.numpy as jnp
from jax.experimental import pallas as pl
from jax.experimental.pallas import tpu as pltpu

LANE = 128
SUBLANE = 8


def _round_up(x, m):
    return ((x + m - 1) // m) * m


def regression_head_kernel(x_ref, w1_ref, b1_ref, w2_ref, b2_ref, o_ref):
    """Fused eval-mode head: out = tanh(x @ W1 + b1) @ W2 + b2.

    x_ref : [TM, Hp]  row tile of features (Hp = hidden padded to 128)
    w1_ref: [Hp, Hp]  dense weight, pre-transposed (in, out), resident
    b1_ref: [1,  Hp]  dense bias, resident
    w2_ref: [Hp, Lp]  out_proj weight, pre-transposed (in, out), resident
    b2_ref: [1,  Lp]  out_proj bias, resident
    o_ref : [TM, Lp]  lane-dense output tile
    """
    x = x_ref[...]
    # dense + tanh (MXU matmul, f32 accumulate; tanh on EUP in f32 -> v5e-safe)
    h = jnp.dot(x, w1_ref[...], preferred_element_type=jnp.float32) + b1_ref[...]
    h = jnp.tanh(h)
    # out_proj
    y = jnp.dot(h.astype(w2_ref.dtype), w2_ref[...],
                preferred_element_type=jnp.float32) + b2_ref[...]
    o_ref[...] = y.astype(o_ref.dtype)


def prepare_regression_head_params(dense_w, dense_b, out_w, out_b):
    """One-time (param-load-time) layout prep — keep out of the per-call hot path.

    PyTorch Linear weights are [out, in]; pre-transpose to [in, out] and zero-pad
    hidden/num_labels up to the 128-lane width so both matmuls and the output store
    are lane-dense.  Zero padding is numerically exact (padded x cols & W1 rows are
    zero, padded b1 is zero so tanh(0)=0, padded W2 rows/cols and b2 are zero).
    """
    H = dense_w.shape[1]
    L = out_w.shape[0]
    Hp = _round_up(H, LANE)
    Lp = _round_up(L, LANE)
    w1 = jnp.zeros((Hp, Hp), dense_w.dtype).at[:H, :H].set(dense_w.T)
    b1 = jnp.zeros((1, Hp), dense_b.dtype).at[0, :H].set(dense_b)
    w2 = jnp.zeros((Hp, Lp), out_w.dtype).at[:H, :L].set(out_w.T)
    b2 = jnp.zeros((1, Lp), out_b.dtype).at[0, :L].set(out_b)
    return {"w1": w1, "b1": b1, "w2": w2, "b2": b2,
            "H": H, "L": L, "Hp": Hp, "Lp": Lp}


def regression_head(features, params, *, row_tile=512, training=False):
    """features: [..., H]; params from prepare_regression_head_params()."""
    # Dropout is identity in eval mode.
    # TODO(synk): training-mode dropout (pltpu.prng_random_bits mask) not implemented.
    assert not training, "RegressionHead Pallas kernel implements eval-mode only"

    H, L = params["H"], params["L"]
    Hp, Lp = params["Hp"], params["Lp"]
    orig_shape = features.shape
    assert orig_shape[-1] == H, (orig_shape, H)

    x2d = features.reshape(-1, H)
    M = x2d.shape[0]

    # Large row tile for pipelining; shrink (multiple of the 8-row sublane) for tiny inputs.
    tm = row_tile if M >= row_tile else _round_up(M, SUBLANE)
    Mp = _round_up(M, tm)

    # Zero-pad rows (to a tile multiple) and hidden columns (to lane width) in one shot.
    x_pad = jnp.zeros((Mp, Hp), features.dtype).at[:M, :H].set(x2d)

    out = pl.pallas_call(
        regression_head_kernel,
        out_shape=jax.ShapeDtypeStruct((Mp, Lp), features.dtype),
        grid=(Mp // tm,),
        in_specs=[
            pl.BlockSpec((tm, Hp), lambda i: (i, 0)),   # x: tiled over rows
            pl.BlockSpec((Hp, Hp), lambda i: (0, 0)),   # W1: resident across grid
            pl.BlockSpec((1, Hp), lambda i: (0, 0)),    # b1: resident
            pl.BlockSpec((Hp, Lp), lambda i: (0, 0)),   # W2: resident
            pl.BlockSpec((1, Lp), lambda i: (0, 0)),    # b2: resident
        ],
        out_specs=pl.BlockSpec((tm, Lp), lambda i: (i, 0)),
        compiler_params=pltpu.CompilerParams(
            dimension_semantics=("parallel",),           # rows shard across v7x's 2 TCs
            vmem_limit_bytes=32 * 1024 * 1024,           # explicit; tiles use ~1.5 MiB
        ),
    )(x_pad, params["w1"], params["b1"], params["w2"], params["b2"])

    return out[:M, :L].reshape(*orig_shape[:-1], L)


def _reference(features, dense_w, dense_b, out_w, out_b):
    return jnp.tanh(features @ dense_w.T + dense_b) @ out_w.T + out_b


if __name__ == "__main__":
    # config.hidden_size = 32, config.num_labels = 4, features = [batch=2, seq=8, hidden=32]
    batch, seq, hidden, num_labels = 2, 8, 32, 4

    key = jax.random.PRNGKey(0)
    k_x, k_w1, k_b1, k_w2, k_b2, k_x2 = jax.random.split(key, 6)

    features = jax.random.normal(k_x, (batch, seq, hidden), dtype=jnp.float32)
    # PyTorch Linear weight layout: [out, in].
    dense_w = jax.random.normal(k_w1, (hidden, hidden), dtype=jnp.float32) * 0.1
    dense_b = jax.random.normal(k_b1, (hidden,), dtype=jnp.float32) * 0.1
    out_w = jax.random.normal(k_w2, (num_labels, hidden), dtype=jnp.float32) * 0.1
    out_b = jax.random.normal(k_b2, (num_labels,), dtype=jnp.float32) * 0.1

    params = prepare_regression_head_params(dense_w, dense_b, out_w, out_b)

    # Small (module-sized) check: single grid step.
    out = regression_head(features, params)
    out = jax.block_until_ready(out)
    ref = _reference(features, dense_w, dense_b, out_w, out_b)
    assert out.shape == (batch, seq, num_labels), out.shape
    assert jnp.allclose(out, ref, atol=1e-5, rtol=1e-5), "mismatch vs reference (small)"

    # Larger-M check: exercises multi-step grid + row padding (M=1200 -> 3 tiles of 512).
    feats2 = jax.random.normal(k_x2, (4, 300, hidden), dtype=jnp.float32)
    out2 = jax.block_until_ready(regression_head(feats2, params))
    ref2 = _reference(feats2, dense_w, dense_b, out_w, out_b)
    assert out2.shape == (4, 300, num_labels), out2.shape
    assert jnp.allclose(out2, ref2, atol=1e-5, rtol=1e-5), "mismatch vs reference (tiled)"

    print("KERNEL_OK")
</pallas_src>

<mosaic_0001>
module attributes {stable_mosaic.version = 11 : i64} {
  func.func @regression_head_kernel(%arg0: i32, %arg1: memref<16x128xf32, #tpu.memory_space<vmem>>, %arg2: memref<128x128xf32, #tpu.memory_space<vmem>>, %arg3: memref<1x128xf32, #tpu.memory_space<vmem>>, %arg4: memref<128x128xf32, #tpu.memory_space<vmem>>, %arg5: memref<1x128xf32, #tpu.memory_space<vmem>>, %arg6: memref<16x128xf32, #tpu.memory_space<vmem>>) attributes {dimension_semantics = [#tpu.dimension_semantics<parallel>], iteration_bounds = array<i64: 1>, scalar_prefetch = 0 : i64, scratch_operands = 0 : i64, tpu.core_type = #tpu.core_type<tc>, window_params = [{transform_indices = @transform_0, window_bounds = array<i64: 16, 128>}, {pipeline_mode = #tpu.pipeline_mode<synchronous>, transform_indices = @transform_1, window_bounds = array<i64: 128, 128>}, {pipeline_mode = #tpu.pipeline_mode<synchronous>, transform_indices = @transform_2, window_bounds = array<i64: 1, 128>}, {pipeline_mode = #tpu.pipeline_mode<synchronous>, transform_indices = @transform_3, window_bounds = array<i64: 128, 128>}, {pipeline_mode = #tpu.pipeline_mode<synchronous>, transform_indices = @transform_4, window_bounds = array<i64: 1, 128>}, {transform_indices = @transform_5, window_bounds = array<i64: 16, 128>}]} {
    %c0 = arith.constant 0 : index
    %c0_0 = arith.constant 0 : index
    %0 = vector.load %arg1[%c0, %c0_0] : memref<16x128xf32, #tpu.memory_space<vmem>>, vector<16x128xf32>
    %c0_1 = arith.constant 0 : index
    %c0_2 = arith.constant 0 : index
    %1 = vector.load %arg2[%c0_1, %c0_2] : memref<128x128xf32, #tpu.memory_space<vmem>>, vector<128x128xf32>
    %cst = arith.constant dense<0.000000e+00> : vector<16x128xf32>
    %2 = tpu.matmul %0, %1, %cst {dimension_numbers = #tpu.dot_dimension_numbers<[1], [0], [0], [1], [0, 0, 1, 1], [], []>} : vector<16x128xf32>, vector<128x128xf32>, vector<16x128xf32> -> vector<16x128xf32>
    %c0_3 = arith.constant 0 : index
    %c0_4 = arith.constant 0 : index
    %3 = vector.load %arg3[%c0_3, %c0_4] : memref<1x128xf32, #tpu.memory_space<vmem>>, vector<1x128xf32>
    %4 = vector.broadcast %3 : vector<1x128xf32> to vector<16x128xf32>
    %5 = arith.addf %2, %4 : vector<16x128xf32>
    %6 = math.tanh %5 : vector<16x128xf32>
    %c0_5 = arith.constant 0 : index
    %c0_6 = arith.constant 0 : index
    %7 = vector.load %arg4[%c0_5, %c0_6] : memref<128x128xf32, #tpu.memory_space<vmem>>, vector<128x128xf32>
    %cst_7 = arith.constant dense<0.000000e+00> : vector<16x128xf32>
    %8 = tpu.matmul %6, %7, %cst_7 {dimension_numbers = #tpu.dot_dimension_numbers<[1], [0], [0], [1], [0, 0, 1, 1], [], []>} : vector<16x128xf32>, vector<128x128xf32>, vector<16x128xf32> -> vector<16x128xf32>
    %c0_8 = arith.constant 0 : index
    %c0_9 = arith.constant 0 : index
    %9 = vector.load %arg5[%c0_8, %c0_9] : memref<1x128xf32, #tpu.memory_space<vmem>>, vector<1x128xf32>
    %10 = vector.broadcast %9 : vector<1x128xf32> to vector<16x128xf32>
    %11 = arith.addf %8, %10 : vector<16x128xf32>
    %c0_10 = arith.constant 0 : index
    %c0_11 = arith.constant 0 : index
    %12 = vector.load %arg6[%c0_10, %c0_11] : memref<16x128xf32, #tpu.memory_space<vmem>>, vector<16x128xf32>
    tpu.vector_store %arg6[%c0_10, %c0_11], %11 {strides = array<i32>} : memref<16x128xf32, #tpu.memory_space<vmem>>, vector<16x128xf32>,
    return
  }
  func.func @transform_0(%arg0: i32) -> (i32, i32) {
    %c0_i32 = arith.constant 0 : i32
    %c0_i32_0 = arith.constant 0 : i32
    return %arg0, %c0_i32 : i32, i32
  }
  func.func @transform_1(%arg0: i32) -> (i32, i32) {
    %c0_i32 = arith.constant 0 : i32
    %c0_i32_0 = arith.constant 0 : i32
    %c0_i32_1 = arith.constant 0 : i32
    return %c0_i32, %c0_i32_0 : i32, i32
  }
  func.func @transform_2(%arg0: i32) -> (i32, i32) {
    %c0_i32 = arith.constant 0 : i32
    %c0_i32_0 = arith.constant 0 : i32
    %c0_i32_1 = arith.constant 0 : i32
    return %c0_i32, %c0_i32_0 : i32, i32
  }
  func.func @transform_3(%arg0: i32) -> (i32, i32) {
    %c0_i32 = arith.constant 0 : i32
    %c0_i32_0 = arith.constant 0 : i32
    %c0_i32_1 = arith.constant 0 : i32
    return %c0_i32, %c0_i32_0 : i32, i32
  }
  func.func @transform_4(%arg0: i32) -> (i32, i32) {
    %c0_i32 = arith.constant 0 : i32
    %c0_i32_0 = arith.constant 0 : i32
    %c0_i32_1 = arith.constant 0 : i32
    return %c0_i32, %c0_i32_0 : i32, i32
  }
  func.func @transform_5(%arg0: i32) -> (i32, i32) {
    %c0_i32 = arith.constant 0 : i32
    %c0_i32_0 = arith.constant 0 : i32
    return %arg0, %c0_i32 : i32, i32
  }
}

</mosaic_0001>

<bundles_post_ra>
// kernel: tpu_custom_call.1
= control target key start
LH: loop header
LB: loop body
LE: loop exit
PB: predicated region body
PF: predicated region fallthrough
CT: control target
= control target key end

     0   :  { %10 = vsyncpa [#allocation3], 0  ;;  %s392_s0 = inlined_call_operand.hbm [shape: f32[16,128], index: 0, kind: input, shape index: {}]   ;;  %s393_s1 = inlined_call_operand.hbm [shape: f32[128,128], index: 1, kind: input, shape index: {}]   ;;  %s394_s2 = inlined_call_operand.vmem [shape: f32[1,128], index: 2, kind: input, shape index: {}]   ;;  %s395_s3 = inlined_call_operand.hbm [shape: f32[128,128], index: 3, kind: input, shape index: {}]   ;;  %s396_s4 = inlined_call_operand.vmem [shape: f32[1,128], index: 4, kind: input, shape index: {}]   ;;  %s397_s5 = inlined_call_operand.hbm [shape: f32[16,128], index: 5, kind: output, shape index: {}]  }
   0x1   :  { %11 = vsyncpa [#allocation6], 0 }
   0x2   :  { %12 = vsyncpa [#allocation4], 0  ;;  %s30_s20 = sshll.u32 %s393_s1, 4  ;;  %s326_s21 = smov [#allocation5]   ;;  %s31_s20 = int_to_ptr.hbm [resolvable:$true] %s30_s20 }
   0x3   :  { %s32_s22 = sshll.u32 %s326_s21, 4  ;;  %s17_s25 = sshll.u32 %s392_s0, 4  ;;  %s33_s22 = int_to_ptr.vmem [resolvable:$true] %s32_s22  ;;  %s18_s25 = int_to_ptr.hbm [resolvable:$true] %s17_s25 }
   0x4   :  { %s327_s26 = smov 128   ;;  %s328_s27 = smov 8  }
   0x5   :  { %38 = dma.hbm_to_vmem [thread:$0]  %s31_s20, 2048, %s33_s22, [#allocation6], %s327_s26, %s327_s26, %s328_s27  }
   0x6   :  { %s329_s28 = smov [#allocation2]   ;;  %s45_s1 = sshll.u32 %s395_s3, 4  ;;  %s46_s1 = int_to_ptr.hbm [resolvable:$true] %s45_s1 }
   0x7   :  { %s19_s29 = sshll.u32 %s329_s28, 4  ;;  %s330_s0 = smov [#allocation7]   ;;  %s20_s29 = int_to_ptr.vmem [resolvable:$true] %s19_s29 }
   0x8   :  { %25 = dma.hbm_to_vmem [thread:$0]  %s18_s25, 256, %s20_s29, [#allocation3], %s327_s26, %s327_s26, %s328_s27  }
   0x9   :  { %s47_s7 = sshll.u32 %s330_s0, 4  ;;  %s48_s7 = int_to_ptr.vmem [resolvable:$true] %s47_s7 }
   0xa   :  { %53 = dma.hbm_to_vmem [thread:$0]  %s46_s1, 2048, %s48_s7, [#allocation6], %s327_s26, %s327_s26, %s328_s27  }
   0xb   :  { %320 = dma.done.wait [#allocation3], 256  }
   0xc   :  { %321 = vsyncadd [#allocation3], 4294967040 }
   0xd   :  { %322 = dma.done.wait [#allocation6], 4096  }
   0xe   :  { %323 = vsyncadd [#allocation6], 4294963200  ;;  %v85_v0 = vld [vmem:[#allocation5 + $0x78] sm:$0xff]  ;;  %v84_v1 = vld [vmem:[#allocation5 + $0x70] sm:$0xff]  ;;  %s331_s11 = smov [#allocation8]   ;;  %s166_s14 = sshll.u32 %s397_s5, 4  ;;  %s167_s14 = int_to_ptr.hbm [resolvable:$true] %s166_s14 }
   0xf   :  { %180 = vmatpush.msra.mxu2 %v85_v0  ;;  %90 = vmatpush.msra.mxu0 %v85_v0  ;;  %v83_v2 = vld [vmem:[#allocation5 + $0x68] sm:$0xff]  ;;  %v82_v3 = vld [vmem:[#allocation5 + $0x60] sm:$0xff]  ;;  %v81_v4 = vld [vmem:[#allocation5 + $0x58] sm:$0xff]  ;;  %s164_s12 = sshll.u32 %s331_s11, 4  ;;  %s165_s12 = int_to_ptr.vmem [resolvable:$true] %s164_s12 }
  0x10   :  { %v130_v5 = vld [vmem:[#allocation7 + $0x78] sm:$0xff]  ;;  %v129_v6 = vld [vmem:[#allocation7 + $0x70] sm:$0xff]  ;;  %v128_v8 = vld [vmem:[#allocation7 + $0x68] sm:$0xff] }
  0x11   :  { %181 = vmatpush.msra.mxu2 %v84_v1  ;;  %91 = vmatpush.msra.mxu0 %v84_v1  ;;  %v80_v7 = vld [vmem:[#allocation5 + $0x50] sm:$0xff]  ;;  %v79_v9 = vld [vmem:[#allocation5 + $0x48] sm:$0xff]  ;;  %v127_v10 = vld [vmem:[#allocation7 + $0x60] sm:$0xff] }
  0x12   :  { %196 = vmatpush.msra.mxu3 %v130_v5  ;;  %135 = vmatpush.msra.mxu1 %v130_v5  ;;  %v78_v11 = vld [vmem:[#allocation5 + $0x40] sm:$0xff]  ;;  %v126_v12 = vld [vmem:[#allocation7 + $0x58] sm:$0xff]  ;;  %v125_v14 = vld [vmem:[#allocation7 + $0x50] sm:$0xff] }
  0x13   :  { %182 = vmatpush.msra.mxu2 %v83_v2  ;;  %92 = vmatpush.msra.mxu0 %v83_v2  ;;  %v77_v13 = vld [vmem:[#allocation5 + $0x38] sm:$0xff]  ;;  %v76_v15 = vld [vmem:[#allocation5 + $0x30] sm:$0xff]  ;;  %v124_v16 = vld [vmem:[#allocation7 + $0x48] sm:$0xff] }
  0x14   :  { %197 = vmatpush.msra.mxu3 %v129_v6  ;;  %136 = vmatpush.msra.mxu1 %v129_v6  ;;  %v75_v17 = vld [vmem:[#allocation5 + $0x28] sm:$0xff]  ;;  %v123_v18 = vld [vmem:[#allocation7 + $0x40] sm:$0xff]  ;;  %v122_v20 = vld [vmem:[#allocation7 + $0x38] sm:$0xff] }
  0x15   :  { %183 = vmatpush.msra.mxu2 %v82_v3  ;;  %93 = vmatpush.msra.mxu0 %v82_v3  ;;  %v74_v19 = vld [vmem:[#allocation5 + $0x20] sm:$0xff]  ;;  %v73_v21 = vld [vmem:[#allocation5 + $0x18] sm:$0xff]  ;;  %v121_v22 = vld [vmem:[#allocation7 + $0x30] sm:$0xff] }
  0x16   :  { %198 = vmatpush.msra.mxu3 %v128_v8  ;;  %137 = vmatpush.msra.mxu1 %v128_v8  ;;  %v72_v23 = vld [vmem:[#allocation5 + $0x10] sm:$0xff]  ;;  %v120_v24 = vld [vmem:[#allocation7 + $0x28] sm:$0xff]  ;;  %v70_v26 = vld [vmem:[#allocation5] sm:$0xff] }
  0x17   :  { %184 = vmatpush.msra.mxu2 %v81_v4  ;;  %94 = vmatpush.msra.mxu0 %v81_v4  ;;  %v71_v25 = vld [vmem:[#allocation5 + $0x8] sm:$0xff]  ;;  %v69_v27 = vld [vmem:[#allocation2 + $0x8] sm:$0xff]  ;;  %v68_v28 = vld [vmem:[#allocation2] sm:$0xff] }
  0x18   :  { %199 = vmatpush.msra.mxu3 %v127_v10  ;;  %138 = vmatpush.msra.mxu1 %v127_v10  ;;  %v119_v29 = vld [vmem:[#allocation7 + $0x20] sm:$0xff]  ;;  %v118_v30 = vld [vmem:[#allocation7 + $0x18] sm:$0xff]  ;;  %v117_v31 = vld [vmem:[#allocation7 + $0x10] sm:$0xff] }
  0x19   :  { %185 = vmatpush.msra.mxu2 %v80_v7  ;;  %95 = vmatpush.msra.mxu0 %v80_v7  ;;  %v116_v32 = vld [vmem:[#allocation7 + $0x8] sm:$0xff]  ;;  %v115_v33 = vld [vmem:[#allocation7] sm:$0xff]  ;;  %v218_v34 = vld [vmem:[%s394_s2] ss:$0 sm:$0xff] }
  0x1a   :  { %200 = vmatpush.msra.mxu3 %v126_v12  ;;  %139 = vmatpush.msra.mxu1 %v126_v12  ;;  %v219_v41 = vld [vmem:[%s396_s4] ss:$0 sm:$0xff] }
  0x1b   :  { %186 = vmatpush.msra.mxu2 %v79_v9  ;;  %96 = vmatpush.msra.mxu0 %v79_v9 }
  0x1c   :  { %201 = vmatpush.msra.mxu3 %v125_v14  ;;  %140 = vmatpush.msra.mxu1 %v125_v14 }
  0x1d   :  { %187 = vmatpush.msra.mxu2 %v78_v11  ;;  %97 = vmatpush.msra.mxu0 %v78_v11 }
  0x1e   :  { %202 = vmatpush.msra.mxu3 %v124_v16  ;;  %141 = vmatpush.msra.mxu1 %v124_v16 }
  0x1f   :  { %188 = vmatpush.msra.mxu2 %v77_v13  ;;  %98 = vmatpush.msra.mxu0 %v77_v13 }
  0x20   :  { %203 = vmatpush.msra.mxu3 %v123_v18  ;;  %142 = vmatpush.msra.mxu1 %v123_v18 }
  0x21   :  { %189 = vmatpush.msra.mxu2 %v76_v15  ;;  %99 = vmatpush.msra.mxu0 %v76_v15 }
  0x22   :  { %204 = vmatpush.msra.mxu3 %v122_v20  ;;  %143 = vmatpush.msra.mxu1 %v122_v20 }
  0x23   :  { %190 = vmatpush.msra.mxu2 %v75_v17  ;;  %100 = vmatpush.msra.mxu0 %v75_v17 }
  0x24   :  { %205 = vmatpush.msra.mxu3 %v121_v22  ;;  %144 = vmatpush.msra.mxu1 %v121_v22 }
  0x25   :  { %191 = vmatpush.msra.mxu2 %v74_v19  ;;  %101 = vmatpush.msra.mxu0 %v74_v19 }
  0x26   :  { %206 = vmatpush.msra.mxu3 %v120_v24  ;;  %145 = vmatpush.msra.mxu1 %v120_v24 }
  0x27   :  { %192 = vmatpush.msra.mxu2 %v73_v21  ;;  %102 = vmatpush.msra.mxu0 %v73_v21 }
  0x28   :  { %207 = vmatpush.msra.mxu3 %v119_v29  ;;  %146 = vmatpush.msra.mxu1 %v119_v29 }
  0x29   :  { %193 = vmatpush.msra.mxu2 %v72_v23  ;;  %103 = vmatpush.msra.mxu0 %v72_v23 }
  0x2a   :  { %208 = vmatpush.msra.mxu3 %v118_v30  ;;  %147 = vmatpush.msra.mxu1 %v118_v30 }
  0x2b   :  { %194 = vmatpush.msra.mxu2 %v71_v25  ;;  %104 = vmatpush.msra.mxu0 %v71_v25 }
  0x2c   :  { %209 = vmatpush.msra.mxu3 %v117_v31  ;;  %148 = vmatpush.msra.mxu1 %v117_v31 }
  0x2d   :  { %195 = vmatpush.msra.mxu2 %v70_v26  ;;  %105 = vmatpush.msra.mxu0 %v70_v26 }
  0x2e   :  { %109 = vmatmul.f32.vlgmr.msra.gmra.mxu2 %v69_v27  ;;  %106 = vmatmul.f32.vlgmr.msra.gmra.mxu0 %v68_v28 }
  0x2f   :  { %210 = vmatpush.msra.mxu3 %v116_v32  ;;  %149 = vmatpush.msra.mxu1 %v116_v32 }
  0x31   :  { %211 = vmatpush.msra.mxu3 %v115_v33  ;;  %150 = vmatpush.msra.mxu1 %v115_v33 }
  0xab   :  { %v107_v35 = vpop.f32.mrf.mxu0 }
  0xac   :  { %v108_v36 = vadd.f32 %v218_v34, %v107_v35 }
  0xae   :  { %220 = vtanh.f32 %v108_v36 }
  0xb1   :  { %v110_v37 = vpop.f32.mrf.mxu2 }
  0xb2   :  { %v111_v38 = vadd.f32 %v218_v34, %v110_v37 }
  0xb4   :  { %v221_v39 = vpop.eup %220  ;;  %222 = vtanh.f32 %v111_v38 }
  0xb5   :  { %151 = vmatmul.f32.vlgmr.msra.gmra.mxu1 %v221_v39 }
  0xba   :  { %v223_v40 = vpop.eup %222 }
  0xbb   :  { %154 = vmatmul.f32.vlgmr.msra.gmra.mxu3 %v223_v40 }
 0x132   :  { %v152_v42 = vpop.f32.mrf.mxu1 }
 0x133   :  { %v153_v43 = vadd.f32 %v219_v41, %v152_v42 }
 0x135   :  { %158 = vst [vmem:[#allocation8] sm:$0xff] %v153_v43 }
 0x13e   :  { %v155_v44 = vpop.f32.mrf.mxu3 }
 0x13f   :  { %v156_v45 = vadd.f32 %v219_v41, %v155_v44 }
 0x141   :  { %159 = vst [vmem:[#allocation8 + $0x8] sm:$0xff] %v156_v45 }
 0x142   :  { %172 = dma.vmem_to_hbm [thread:$0]  %s165_s12, 256, %s167_s14, [#allocation4], %s327_s26, %s327_s26, %s328_s27  }
 0x143   :  { %324 = dma.done.wait [#allocation4], 256  }
 0x144   :  { %325 = vsyncadd [#allocation4], 4294967040 }
 0x145   :  { %177 = vsyncpa [#allocation3], 1 }
 0x146   :  { %178 = vsyncpa [#allocation6], 1 }
 0x147   :  { %179 = vsyncpa [#allocation4], 1 }

</bundles_post_ra>
